<compile_context>
chip_gen: v7x
topology: tpu7x:2x2x1
jax: 0.10.0
libtpu: 0.0.40
codegen_flags: <defaults>
</compile_context>

<pallas_src>
import jax
import jax.numpy as jnp
from jax.experimental import pallas as pl
from jax.experimental.pallas import tpu as pltpu


def state_repr_kernel(uidx_ref, midx_ref, utab_ref, itab_ref, w_ref, b_ref, out_ref):
    # uidx_ref: (TB, 1)          int32  VMEM  -- user indices for this batch tile
    # midx_ref: (TB, N)          int32  VMEM  -- item ("memory") indices for this batch tile
    # utab_ref: (num_users, E)   f32    VMEM  -- resident user embedding table
    # itab_ref: (num_items, E)   f32    VMEM  -- resident item embedding table
    # w_ref:    (N,)             f32    SMEM  -- Conv1d(k=1) weight
    # b_ref:    (1,)             f32    SMEM  -- Conv1d bias
    # out_ref:  (TB, OUTW)       f32    VMEM  -- [u | u*drr | drr | zero-pad to 128-multiple]
    tb = out_ref.shape[0]
    num_users, e = utab_ref.shape
    num_items = itab_ref.shape[0]
    n = midx_ref.shape[1]
    out_w = out_ref.shape[1]

    # ---- user gather as one-hot @ resident table (exact at HIGHEST precision) ----
    uid = uidx_ref[...]                                                   # (TB, 1)
    iota_u = jax.lax.broadcasted_iota(jnp.int32, (tb, num_users), 1)      # lane iota
    u_onehot = (uid == iota_u).astype(jnp.float32)                        # (TB, num_users)
    u = jnp.dot(u_onehot, utab_ref[...],
                precision=jax.lax.Precision.HIGHEST,
                preferred_element_type=jnp.float32)                       # (TB, E)

    # ---- fused item gather + k=1 Conv1d: weighted scatter matrix @ resident table ----
    # A[b, j] = sum_n w[n] * [memory[b, n] == j]   (N is small & static -> unrolled)
    mids = midx_ref[...]                                                  # (TB, N)
    iota_i = jax.lax.broadcasted_iota(jnp.int32, (tb, num_items), 1)
    a = jnp.zeros((tb, num_items), jnp.float32)
    for j in range(n):
        a = a + jnp.where(mids[:, j:j + 1] == iota_i, w_ref[j], 0.0)
    drr = jnp.dot(a, itab_ref[...],
                  precision=jax.lax.Precision.HIGHEST,
                  preferred_element_type=jnp.float32) + b_ref[0]          # (TB, E)

    # ---- single full-width lane-dense store ----
    pieces = [u, u * drr, drr]
    pad = out_w - 3 * e
    if pad > 0:
        pieces.append(jnp.zeros((tb, pad), jnp.float32))
    out_ref[...] = jnp.concatenate(pieces, axis=-1)


def _choose_batch_tile(B):
    b8 = -(-B // 8) * 8                    # round up to sublane multiple
    if b8 <= 1024:
        return b8                          # single tile: don't force a pointless split
    tiles = -(-b8 // 1024)
    if tiles % 2:                          # v7x: even tile count -> balanced 2-TC split
        tiles += 1
    tb = -(-b8 // tiles)
    return -(-tb // 8) * 8


def state_repr_forward(user, memory, user_table, item_table, conv_w, conv_b, *, tb=None):
    """user: [B] int, memory: [B, N] int, tables: [num_*, E] f32,
    conv_w: [N] f32, conv_b: [1] f32.  Returns [B, 3*E] f32."""
    B = int(user.shape[0])
    N = int(memory.shape[1])
    num_users, E = int(user_table.shape[0]), int(user_table.shape[1])
    num_items = int(item_table.shape[0])
    assert int(item_table.shape[1]) == E

    uidx = user.astype(jnp.int32).reshape(B, 1)
    midx = memory.astype(jnp.int32)
    utab = user_table.astype(jnp.float32)
    itab = item_table.astype(jnp.float32)
    w = conv_w.reshape(N).astype(jnp.float32)
    b = conv_b.reshape(1).astype(jnp.float32)

    if tb is None:
        tb = _choose_batch_tile(B)
    n_tiles = pl.cdiv(B, tb)
    Bp = n_tiles * tb
    if Bp != B:
        # pad with index 0 (valid); padded rows are sliced off below
        uidx = jnp.pad(uidx, ((0, Bp - B), (0, 0)))
        midx = jnp.pad(midx, ((0, Bp - B), (0, 0)))

    out_w = pl.cdiv(3 * E, 128) * 128      # lane-dense output width (pad sliced off below)

    grid_spec = pltpu.PrefetchScalarGridSpec(
        num_scalar_prefetch=0,
        grid=(n_tiles,),
        in_specs=[
            pl.BlockSpec((tb, 1), lambda i: (i, 0)),               # user indices
            pl.BlockSpec((tb, N), lambda i: (i, 0)),               # memory indices
            pl.BlockSpec((num_users, E), lambda i: (0, 0)),        # user table, VMEM-resident
            pl.BlockSpec((num_items, E), lambda i: (0, 0)),        # item table, VMEM-resident
            pl.BlockSpec(memory_space=pltpu.SMEM),                 # conv weight (N,)
            pl.BlockSpec(memory_space=pltpu.SMEM),                 # conv bias (1,)
        ],
        out_specs=pl.BlockSpec((tb, out_w), lambda i: (i, 0)),
    )

    flops = (2 * Bp * E * (num_users + num_items)      # the two gather/conv matmuls
             + Bp * num_users                          # user one-hot build
             + 2 * N * Bp * num_items                  # weighted scatter-matrix build
             + 2 * Bp * E)                             # u*drr + bias
    bytes_accessed = (Bp * (N + 1) * 4
                      + (num_users + num_items) * E * 4
                      + Bp * out_w * 4)
    cost = pl.CostEstimate(flops=flops, transcendentals=0, bytes_accessed=bytes_accessed)

    out = pl.pallas_call(
        state_repr_kernel,
        out_shape=jax.ShapeDtypeStruct((Bp, out_w), jnp.float32),
        grid_spec=grid_spec,
        compiler_params=pltpu.CompilerParams(
            dimension_semantics=("parallel",),
            vmem_limit_bytes=32 * 1024 * 1024,
        ),
        cost_estimate=cost,
    )(uidx, midx, utab, itab, w, b)

    return out[:B, :3 * E]


if __name__ == "__main__":
    key = jax.random.PRNGKey(0)
    B, N, E = 16, 8, 32          # batch, memory length (Conv1d in_channels), embedding dim
    num_users, num_items = 16, 64

    k1, k2, k3, k4, k5 = jax.random.split(key, 5)
    # Deterministic synthetic stand-ins for the CSV-loaded embedding tables.
    user_table = jax.random.normal(k1, (num_users, E), dtype=jnp.float32)
    item_table = jax.random.normal(k2, (num_items, E), dtype=jnp.float32)
    # Conv1d weight shape in torch is (1, N, 1); flattened to (N,). nn.init.uniform_ -> U[0,1).
    conv_w = jax.random.uniform(k3, (N,), dtype=jnp.float32)
    conv_b = jnp.zeros((1,), dtype=jnp.float32)   # bias.data.zero_()

    user = jax.random.randint(k4, (B,), 0, num_users, dtype=jnp.int32)
    memory = jax.random.randint(k5, (B, N), 0, num_items, dtype=jnp.int32)

    out = state_repr_forward(user, memory, user_table, item_table, conv_w, conv_b)
    out = jax.block_until_ready(out)

    # Plain-JAX reference for correctness.
    uu = user_table[user]                                 # [B, E]
    items_ref = item_table[memory]                        # [B, N, E]
    drr = jnp.einsum('n,bne->be', conv_w, items_ref) + conv_b[0]
    ref = jnp.concatenate([uu, uu * drr, drr], axis=1)    # [B, 3E]
    assert out.shape == (B, 3 * E)
    assert jnp.allclose(out, ref, atol=1e-4, rtol=1e-4)

    print("KERNEL_OK")
</pallas_src>

<mosaic_0001>
module attributes {stable_mosaic.version = 11 : i64} {
  func.func @state_repr_kernel(%arg0: i32, %arg1: memref<16x1xi32, #tpu.memory_space<vmem>>, %arg2: memref<16x8xi32, #tpu.memory_space<vmem>>, %arg3: memref<16x32xf32, #tpu.memory_space<vmem>>, %arg4: memref<64x32xf32, #tpu.memory_space<vmem>>, %arg5: memref<8xf32, #tpu.memory_space<smem>>, %arg6: memref<1xf32, #tpu.memory_space<smem>>, %arg7: memref<16x128xf32, #tpu.memory_space<vmem>>) attributes {dimension_semantics = [#tpu.dimension_semantics<parallel>], iteration_bounds = array<i64: 1>, scalar_prefetch = 0 : i64, scratch_operands = 0 : i64, tpu.core_type = #tpu.core_type<tc>, window_params = [{transform_indices = @transform_0, window_bounds = array<i64: 16, 1>}, {transform_indices = @transform_1, window_bounds = array<i64: 16, 8>}, {pipeline_mode = #tpu.pipeline_mode<synchronous>, transform_indices = @transform_2, window_bounds = array<i64: 16, 32>}, {pipeline_mode = #tpu.pipeline_mode<synchronous>, transform_indices = @transform_3, window_bounds = array<i64: 64, 32>}, {transform_indices = @transform_4, window_bounds = array<i64: 8>}, {transform_indices = @transform_5, window_bounds = array<i64: 1>}, {transform_indices = @transform_6, window_bounds = array<i64: 16, 128>}]} {
    %c0 = arith.constant 0 : index
    %c0_0 = arith.constant 0 : index
    %0 = vector.load %arg1[%c0, %c0_0] : memref<16x1xi32, #tpu.memory_space<vmem>>, vector<16x1xi32>
    %1 = tpu.iota {dimensions = array<i32: 1>} : vector<16x16xi32>
    %2 = vector.broadcast %0 : vector<16x1xi32> to vector<16x16xi32>
    %3 = arith.cmpi eq, %2, %1 : vector<16x16xi32>
    %4 = arith.extui %3 : vector<16x16xi1> to vector<16x16xi32>
    %5 = arith.sitofp %4 : vector<16x16xi32> to vector<16x16xf32>
    %c0_1 = arith.constant 0 : index
    %c0_2 = arith.constant 0 : index
    %6 = vector.load %arg3[%c0_1, %c0_2] : memref<16x32xf32, #tpu.memory_space<vmem>>, vector<16x32xf32>
    %cst = arith.constant dense<0.000000e+00> : vector<16x32xf32>
    %7 = tpu.matmul %5, %6, %cst {dimension_numbers = #tpu.dot_dimension_numbers<[1], [0], [0], [1], [0, 0, 1, 1], [], []>, precision = #tpu.contract_precision<fp32>} : vector<16x16xf32>, vector<16x32xf32>, vector<16x32xf32> -> vector<16x32xf32>
    %c0_3 = arith.constant 0 : index
    %c0_4 = arith.constant 0 : index
    %8 = vector.load %arg2[%c0_3, %c0_4] : memref<16x8xi32, #tpu.memory_space<vmem>>, vector<16x8xi32>
    %9 = tpu.iota {dimensions = array<i32: 1>} : vector<16x64xi32>
    %cst_5 = arith.constant 0.000000e+00 : f32
    %10 = vector.broadcast %cst_5 : f32 to vector<16x64xf32>
    %11 = vector.extract_strided_slice %8 {offsets = [0, 0], sizes = [16, 1], strides = [1, 1]} : vector<16x8xi32> to vector<16x1xi32>
    %12 = vector.broadcast %11 : vector<16x1xi32> to vector<16x64xi32>
    %13 = arith.cmpi eq, %12, %9 : vector<16x64xi32>
    %c0_6 = arith.constant 0 : index
    %14 = memref.load %arg5[%c0_6] : memref<8xf32, #tpu.memory_space<smem>>
    %cst_7 = arith.constant 0.000000e+00 : f32
    %15 = vector.broadcast %14 : f32 to vector<16x64xf32>
    %16 = vector.broadcast %cst_7 : f32 to vector<16x64xf32>
    %17 = arith.select %13, %15, %16 : vector<16x64xi1>, vector<16x64xf32>
    %18 = arith.addf %10, %17 : vector<16x64xf32>
    %19 = vector.extract_strided_slice %8 {offsets = [0, 1], sizes = [16, 1], strides = [1, 1]} : vector<16x8xi32> to vector<16x1xi32>
    %20 = vector.broadcast %19 : vector<16x1xi32> to vector<16x64xi32>
    %21 = arith.cmpi eq, %20, %9 : vector<16x64xi32>
    %c1 = arith.constant 1 : index
    %22 = memref.load %arg5[%c1] : memref<8xf32, #tpu.memory_space<smem>>
    %cst_8 = arith.constant 0.000000e+00 : f32
    %23 = vector.broadcast %22 : f32 to vector<16x64xf32>
    %24 = vector.broadcast %cst_8 : f32 to vector<16x64xf32>
    %25 = arith.select %21, %23, %24 : vector<16x64xi1>, vector<16x64xf32>
    %26 = arith.addf %18, %25 : vector<16x64xf32>
    %27 = vector.extract_strided_slice %8 {offsets = [0, 2], sizes = [16, 1], strides = [1, 1]} : vector<16x8xi32> to vector<16x1xi32>
    %28 = vector.broadcast %27 : vector<16x1xi32> to vector<16x64xi32>
    %29 = arith.cmpi eq, %28, %9 : vector<16x64xi32>
    %c2 = arith.constant 2 : index
    %30 = memref.load %arg5[%c2] : memref<8xf32, #tpu.memory_space<smem>>
    %cst_9 = arith.constant 0.000000e+00 : f32
    %31 = vector.broadcast %30 : f32 to vector<16x64xf32>
    %32 = vector.broadcast %cst_9 : f32 to vector<16x64xf32>
    %33 = arith.select %29, %31, %32 : vector<16x64xi1>, vector<16x64xf32>
    %34 = arith.addf %26, %33 : vector<16x64xf32>
    %35 = vector.extract_strided_slice %8 {offsets = [0, 3], sizes = [16, 1], strides = [1, 1]} : vector<16x8xi32> to vector<16x1xi32>
    %36 = vector.broadcast %35 : vector<16x1xi32> to vector<16x64xi32>
    %37 = arith.cmpi eq, %36, %9 : vector<16x64xi32>
    %c3 = arith.constant 3 : index
    %38 = memref.load %arg5[%c3] : memref<8xf32, #tpu.memory_space<smem>>
    %cst_10 = arith.constant 0.000000e+00 : f32
    %39 = vector.broadcast %38 : f32 to vector<16x64xf32>
    %40 = vector.broadcast %cst_10 : f32 to vector<16x64xf32>
    %41 = arith.select %37, %39, %40 : vector<16x64xi1>, vector<16x64xf32>
    %42 = arith.addf %34, %41 : vector<16x64xf32>
    %43 = vector.extract_strided_slice %8 {offsets = [0, 4], sizes = [16, 1], strides = [1, 1]} : vector<16x8xi32> to vector<16x1xi32>
    %44 = vector.broadcast %43 : vector<16x1xi32> to vector<16x64xi32>
    %45 = arith.cmpi eq, %44, %9 : vector<16x64xi32>
    %c4 = arith.constant 4 : index
    %46 = memref.load %arg5[%c4] : memref<8xf32, #tpu.memory_space<smem>>
    %cst_11 = arith.constant 0.000000e+00 : f32
    %47 = vector.broadcast %46 : f32 to vector<16x64xf32>
    %48 = vector.broadcast %cst_11 : f32 to vector<16x64xf32>
    %49 = arith.select %45, %47, %48 : vector<16x64xi1>, vector<16x64xf32>
    %50 = arith.addf %42, %49 : vector<16x64xf32>
    %51 = vector.extract_strided_slice %8 {offsets = [0, 5], sizes = [16, 1], strides = [1, 1]} : vector<16x8xi32> to vector<16x1xi32>
    %52 = vector.broadcast %51 : vector<16x1xi32> to vector<16x64xi32>
    %53 = arith.cmpi eq, %52, %9 : vector<16x64xi32>
    %c5 = arith.constant 5 : index
    %54 = memref.load %arg5[%c5] : memref<8xf32, #tpu.memory_space<smem>>
    %cst_12 = arith.constant 0.000000e+00 : f32
    %55 = vector.broadcast %54 : f32 to vector<16x64xf32>
    %56 = vector.broadcast %cst_12 : f32 to vector<16x64xf32>
    %57 = arith.select %53, %55, %56 : vector<16x64xi1>, vector<16x64xf32>
    %58 = arith.addf %50, %57 : vector<16x64xf32>
    %59 = vector.extract_strided_slice %8 {offsets = [0, 6], sizes = [16, 1], strides = [1, 1]} : vector<16x8xi32> to vector<16x1xi32>
    %60 = vector.broadcast %59 : vector<16x1xi32> to vector<16x64xi32>
    %61 = arith.cmpi eq, %60, %9 : vector<16x64xi32>
    %c6 = arith.constant 6 : index
    %62 = memref.load %arg5[%c6] : memref<8xf32, #tpu.memory_space<smem>>
    %cst_13 = arith.constant 0.000000e+00 : f32
    %63 = vector.broadcast %62 : f32 to vector<16x64xf32>
    %64 = vector.broadcast %cst_13 : f32 to vector<16x64xf32>
    %65 = arith.select %61, %63, %64 : vector<16x64xi1>, vector<16x64xf32>
    %66 = arith.addf %58, %65 : vector<16x64xf32>
    %67 = vector.extract_strided_slice %8 {offsets = [0, 7], sizes = [16, 1], strides = [1, 1]} : vector<16x8xi32> to vector<16x1xi32>
    %68 = vector.broadcast %67 : vector<16x1xi32> to vector<16x64xi32>
    %69 = arith.cmpi eq, %68, %9 : vector<16x64xi32>
    %c7 = arith.constant 7 : index
    %70 = memref.load %arg5[%c7] : memref<8xf32, #tpu.memory_space<smem>>
    %cst_14 = arith.constant 0.000000e+00 : f32
    %71 = vector.broadcast %70 : f32 to vector<16x64xf32>
    %72 = vector.broadcast %cst_14 : f32 to vector<16x64xf32>
    %73 = arith.select %69, %71, %72 : vector<16x64xi1>, vector<16x64xf32>
    %74 = arith.addf %66, %73 : vector<16x64xf32>
    %c0_15 = arith.constant 0 : index
    %c0_16 = arith.constant 0 : index
    %75 = vector.load %arg4[%c0_15, %c0_16] : memref<64x32xf32, #tpu.memory_space<vmem>>, vector<64x32xf32>
    %cst_17 = arith.constant dense<0.000000e+00> : vector<16x32xf32>
    %76 = tpu.matmul %74, %75, %cst_17 {dimension_numbers = #tpu.dot_dimension_numbers<[1], [0], [0], [1], [0, 0, 1, 1], [], []>, precision = #tpu.contract_precision<fp32>} : vector<16x64xf32>, vector<64x32xf32>, vector<16x32xf32> -> vector<16x32xf32>
    %c0_18 = arith.constant 0 : index
    %77 = memref.load %arg6[%c0_18] : memref<1xf32, #tpu.memory_space<smem>>
    %78 = vector.broadcast %77 : f32 to vector<16x32xf32>
    %79 = arith.addf %76, %78 : vector<16x32xf32>
    %80 = arith.mulf %7, %79 : vector<16x32xf32>
    %cst_19 = arith.constant 0.000000e+00 : f32
    %81 = vector.broadcast %cst_19 : f32 to vector<16x32xf32>
    %82 = tpu.concatenate %7, %80, %79, %81 in 1 : vector<16x32xf32>, vector<16x32xf32>, vector<16x32xf32>, vector<16x32xf32> -> vector<16x128xf32>
    %c0_20 = arith.constant 0 : index
    %c0_21 = arith.constant 0 : index
    %83 = vector.load %arg7[%c0_20, %c0_21] : memref<16x128xf32, #tpu.memory_space<vmem>>, vector<16x128xf32>
    tpu.vector_store %arg7[%c0_20, %c0_21], %82 {strides = array<i32>} : memref<16x128xf32, #tpu.memory_space<vmem>>, vector<16x128xf32>,
    return
  }
  func.func @transform_0(%arg0: i32) -> (i32, i32) {
    %c0_i32 = arith.constant 0 : i32
    %c0_i32_0 = arith.constant 0 : i32
    return %arg0, %c0_i32 : i32, i32
  }
  func.func @transform_1(%arg0: i32) -> (i32, i32) {
    %c0_i32 = arith.constant 0 : i32
    %c0_i32_0 = arith.constant 0 : i32
    return %arg0, %c0_i32 : i32, i32
  }
  func.func @transform_2(%arg0: i32) -> (i32, i32) {
    %c0_i32 = arith.constant 0 : i32
    %c0_i32_0 = arith.constant 0 : i32
    %c0_i32_1 = arith.constant 0 : i32
    return %c0_i32, %c0_i32_0 : i32, i32
  }
  func.func @transform_3(%arg0: i32) -> (i32, i32) {
    %c0_i32 = arith.constant 0 : i32
    %c0_i32_0 = arith.constant 0 : i32
    %c0_i32_1 = arith.constant 0 : i32
    return %c0_i32, %c0_i32_0 : i32, i32
  }
  func.func @transform_4(%arg0: i32) -> i32 {
    %c0_i32 = arith.constant 0 : i32
    %c0_i32_0 = arith.constant 0 : i32
    return %c0_i32 : i32
  }
  func.func @transform_5(%arg0: i32) -> i32 {
    %c0_i32 = arith.constant 0 : i32
    %c0_i32_0 = arith.constant 0 : i32
    return %c0_i32 : i32
  }
  func.func @transform_6(%arg0: i32) -> (i32, i32) {
    %c0_i32 = arith.constant 0 : i32
    %c0_i32_0 = arith.constant 0 : i32
    return %arg0, %c0_i32 : i32, i32
  }
}

</mosaic_0001>

<bundles_post_ra>
// kernel: tpu_custom_call.1
= control target key start
LH: loop header
LB: loop body
LE: loop exit
PB: predicated region body
PF: predicated region fallthrough
CT: control target
= control target key end

     0   :  { %12 = vsyncpa [#allocation5], 0  ;;  %s2078_s0 = inlined_call_operand.vmem [shape: s32[16,1], index: 0, kind: input, shape index: {}]   ;;  %s2079_s1 = inlined_call_operand.vmem [shape: s32[16,8], index: 1, kind: input, shape index: {}]   ;;  %s2080_s2 = inlined_call_operand.vmem [shape: f32[16,32], index: 2, kind: input, shape index: {}]   ;;  %s2081_s3 = inlined_call_operand.vmem [shape: f32[64,32], index: 3, kind: input, shape index: {}]   ;;  %s2082_s4 = inlined_call_operand.vmem [shape: f32[8], index: 4, kind: input, shape index: {}]   ;;  %s2083_s5 = inlined_call_operand.<no memory space> [shape: f32[1], index: 5, kind: input, shape index: {}]   ;;  %s2084_s6 = inlined_call_operand.hbm [shape: f32[16,128], index: 6, kind: output, shape index: {}]  }
   0x1   :  { %13 = vsyncpa [#allocation4], 0  ;;  %s28_s23 = sshll.u32 %s2082_s4, 4  ;;  %s29_s23 = int_to_ptr.vmem [resolvable:$true] %s28_s23 }
   0x2   :  { %s1747_s24 = scalar_lea.vmem %s29_s23, 16  ;;  %p1752_p1 = scmp.lt.s32.totalorder %s29_s23, %s29_s23 }
   0x3   :  { %p1748_p0 = scmp.ne.s32.totalorder %s29_s23, %s1747_s24  ;;  %p1753_p2 = scmp.lt.s32.totalorder %s1747_s24, %s1747_s24 }
   0x5   :  { %p1754_p3 = por %p1753_p2, %p1752_p1 }
   0x7   :  { %p1755_p4 = pnand %p1754_p3, %p1748_p0 }
   0x9   :  { %1758 = shalt.err (!%p1755_p4)
}
   0xa   :  { %s1785_s25 = smov [#allocation3]  }
   0xb   :  { %31 = dma.vmem_to_smem %s29_s23, 16, %s1785_s25, [#allocation5]  }
   0xc   :  { %1781 = dma.done.wait [#allocation5], 16  }
   0xd   :  { %1782 = vsyncadd [#allocation5], 4294967280 }
   0xe   :  { %37 = sfence }
   0xf   :  { %v1841_v0 = vld [vmem:[%s2079_s1] sm:$0xff]  ;;  %v1786_v2 = vmov 0   ;;  %v39_v3 = vld [vmem:[%s2078_s0 + $0x8] sm:$0xff]  ;;  %v1787_v4 = vmov 1   ;;  %v1788_v15 = vmov 2   ;;  %v1789_v20 = vmov 3  }
  0x10   :  { %v38_v1 = vld [vmem:[%s2078_s0] sm:$0xff]  ;;  %1734 = vset.pattern.permute.xlu1 %v1786_v2  ;;  %1733 = vset.pattern.permute.xlu0 %v1786_v2  ;;  %v1854_v5 = vld [vmem:[%s2079_s1 + $0x8] sm:$0xff]  ;;  %v1790_v22 = vmov 5   ;;  %v1791_v23 = vmov 4   ;;  %v1792_v25 = vmov 6   ;;  %v1793_v28 = vmov 7  }
  0x11   :  { %568 = vperm.xlu1 %1734, %v1841_v0   ;;  %43 = vperm.xlu0 %1733, %v38_v1   ;;  %v54_v6 = vld [vmem:[%s2080_s2] sm:$0xff]  ;;  %v55_v7 = vld [vmem:[%s2080_s2 + $0x8] sm:$0xff]  ;;  %v681_v33 = vld [vmem:[%s2081_s3 + $0x10] sm:$0xff]  ;;  %vm56_vm0 = vcmask 130048   ;;  %s1960_s26 = sld [smem:[#allocation3]]  ;;  %s1962_s27 = sld [smem:[#allocation3 + $0x2]] }
  0x12   :  { %v64_v8 = vand.u32 4294901760, %v54_v6  ;;  %v67_v9 = vand.u32 4294901760, %v55_v7  ;;  %v679_v26 = vld [vmem:[%s2081_s3] sm:$0xff]  ;;  %v680_v27 = vld [vmem:[%s2081_s3 + $0x8] sm:$0xff]  ;;  %v682_v34 = vld [vmem:[%s2081_s3 + $0x18] sm:$0xff]  ;;  %v703_v36 = vand.u32 4294901760, %v681_v33 }
  0x13   :  { %v697_v29 = vand.u32 4294901760, %v679_v26  ;;  %v700_v30 = vand.u32 4294901760, %v680_v27  ;;  %v706_v37 = vand.u32 4294901760, %v682_v34  ;;  %v683_v40 = vld [vmem:[%s2081_s3 + $0x20] sm:$0xff]  ;;  %v684_v41 = vld [vmem:[%s2081_s3 + $0x28] sm:$0xff]  ;;  %v685_v48 = vld [vmem:[%s2081_s3 + $0x30] sm:$0xff] }
  0x14   :  { %v1864_v10 = vpack.c.bf16 %v67_v9, %v64_v8  ;;  %v152_v11 = vsub.f32 %v54_v6, %v64_v8  ;;  %v159_v12 = vsub.f32 %v55_v7, %v67_v9  ;;  %v805_v38 = vsub.f32 %v681_v33, %v703_v36  ;;  %v686_v49 = vld [vmem:[%s2081_s3 + $0x38] sm:$0xff]  ;;  %s1957_s3 = sld [smem:[#allocation3 + $0x1]]  ;;  %s1964_s28 = sld [smem:[#allocation3 + $0x3]] }
  0x15   :  { %1735 = vset.pattern.permute.xlu1 %v1787_v4  ;;  %46 = vperm.xlu0 %1733, %v39_v3   ;;  %v791_v31 = vsub.f32 %v679_v26, %v697_v29  ;;  %v798_v32 = vsub.f32 %v680_v27, %v700_v30  ;;  %v812_v39 = vsub.f32 %v682_v34, %v706_v37  ;;  %v709_v44 = vand.u32 4294901760, %v683_v40  ;;  %s1966_s4 = sld [smem:[#allocation3 + $0x4]]  ;;  %s1974_s29 = sld [smem:[#allocation3 + $0x5]] }
  0x16   :  { %582 = vperm.xlu1 %1735, %v1841_v0   ;;  %1577 = vmatprep.subr.bf16.mxu0 %v1864_v10  ;;  %v153_v13 = vand.u32 4294901760, %v152_v11  ;;  %v160_v14 = vand.u32 4294901760, %v159_v12  ;;  %v1877_v24 = vpack.c.bf16 %v159_v12, %v152_v11  ;;  %v712_v45 = vand.u32 4294901760, %v684_v41  ;;  %s1988_s30 = sld [smem:[#allocation3 + $0x6]]  ;;  %s1992_s7 = sld [smem:[#allocation3 + $0x7]] }
  0x17   :  { %1579 = vmatpush3.bf16.msra.mxu0 %v1864_v10  ;;  %v1632_v35 = vpack.c.bf16 %v798_v32, %v791_v31  ;;  %v1636_v43 = vpack.c.bf16 %v812_v39, %v805_v38  ;;  %v819_v46 = vsub.f32 %v683_v40, %v709_v44  ;;  %v715_v51 = vand.u32 4294901760, %v685_v48  ;;  %s1795_s10 = smov 32   ;;  %s1796_s11 = smov 64  }
  0x18   :  { %v154_v16 = vsub.f32 %v152_v11, %v153_v13  ;;  %v161_v17 = vsub.f32 %v159_v12, %v160_v14  ;;  %v1901_v42 = vpack.c.bf16 %v160_v14, %v153_v13  ;;  %v826_v47 = vsub.f32 %v684_v41, %v712_v45  ;;  %s1797_s12 = smov [#allocation6]  }
  0x19   :  { %571 = vperm.xlu0 %1733, %v1854_v5   ;;  %1633 = vmatprep.subr.bf16.mxu1 %v1632_v35  ;;  %v718_v52 = vand.u32 4294901760, %v686_v49  ;;  %v833_v53 = vsub.f32 %v685_v48, %v715_v51  ;;  %v1911_v55 = vpack.c.bf16 %v706_v37, %v703_v36  ;;  %v1913_v56 = vpack.c.bf16 %v700_v30, %v697_v29  ;;  %s1309_s0 = sshll.u32 %s1797_s12, 4  ;;  %s1310_s0 = int_to_ptr.vmem [resolvable:$true] %s1309_s0 }
  0x1a   :  { %585 = vperm.xlu1 %1735, %v1854_v5   ;;  %v155_v18 = vand.u32 4294901760, %v154_v16  ;;  %v162_v19 = vand.u32 4294901760, %v161_v17  ;;  %1635 = vmatpush3.bf16.msra.mxu1 %v1632_v35  ;;  %v1640_v50 = vpack.c.bf16 %v826_v47, %v819_v46  ;;  %v1915_v58 = vpack.c.bf16 %v712_v45, %v709_v44  ;;  %p1764_p6 = scmp.lt.s32.totalorder %s1310_s0, %s1310_s0 }
  0x1b   :  { %1637 = vmatprep.subr.bf16.mxu1 %v1636_v43  ;;  %v840_v54 = vsub.f32 %v686_v49, %v718_v52  ;;  %v1917_v59 = vpack.c.bf16 %v718_v52, %v715_v51  ;;  %v792_v60 = vand.u32 4294901760, %v791_v31  ;;  %v799_v61 = vand.u32 4294901760, %v798_v32 }
  0x1c   :  { %v1870_v21 = vpack.c.bf16 %v162_v19, %v155_v18  ;;  %v806_v2 = vand.u32 4294901760, %v805_v38  ;;  %v813_v3 = vand.u32 4294901760, %v812_v39  ;;  %v820_v11 = vand.u32 4294901760, %v819_v46 }
  0x1d   :  { %1736 = vset.pattern.permute.xlu0 %v1788_v15  ;;  %v1644_v57 = vpack.c.bf16 %v840_v54, %v833_v53  ;;  %v793_v62 = vsub.f32 %v791_v31, %v792_v60  ;;  %v800_v63 = vsub.f32 %v798_v32, %v799_v61  ;;  %v1922_v7 = vpack.c.bf16 %v799_v61, %v792_v60 }
  0x1e   :  { %1737 = vset.pattern.permute.xlu1 %v1788_v15  ;;  %596 = vperm.xlu0 %1736, %v1841_v0   ;;  %v814_v6 = vsub.f32 %v812_v39, %v813_v3  ;;  %v827_v12 = vand.u32 4294901760, %v826_v47  ;;  %v821_v14 = vsub.f32 %v819_v46, %v820_v11  ;;  %v1926_v16 = vpack.c.bf16 %v813_v3, %v806_v2 }
  0x1f   :  { %599 = vperm.xlu1 %1737, %v1854_v5   ;;  %1581 = vmatprep.subr.bf16.mxu0 %v1870_v21  ;;  %v801_v1 = vand.u32 4294901760, %v800_v63  ;;  %v834_v19 = vand.u32 4294901760, %v833_v53  ;;  %v40_v31 = vlaneseq  ;;  %v1794_v35 = vmov 0.0  }
  0x20   :  { %1639 = vmatpush3.bf16.msra.mxu1 %v1636_v43  ;;  %v815_v9 = vand.u32 4294901760, %v814_v6  ;;  %v828_v15 = vsub.f32 %v826_v47, %v827_v12  ;;  %v822_v17 = vand.u32 4294901760, %v821_v14  ;;  %v1930_v26 = vpack.c.bf16 %v827_v12, %v820_v11 }
  0x21   :  { %1641 = vmatprep.subr.bf16.mxu1 %v1640_v50  ;;  %v1936_v32 = vand.u32 127, %v40_v31  ;;  %v576_v61 = vstv %s1960_s26  ;;  %v632_v6 = vstv %s1966_s4 }
  0x22   :  { %1739 = vset.pattern.permute.xlu0 %v1789_v20  ;;  %v829_v18 = vand.u32 4294901760, %v828_v15 }
  0x23   :  { %1738 = vset.pattern.permute.xlu1 %v1789_v20  ;;  %613 = vperm.xlu0 %1739, %v1854_v5   ;;  %v841_v20 = vand.u32 4294901760, %v840_v54 }
  0x24   :  { %610 = vperm.xlu1 %1738, %v1841_v0   ;;  %1643 = vmatpush3.bf16.msra.mxu1 %v1640_v50 }
  0x25   :  { %1645 = vmatprep.subr.bf16.mxu1 %v1644_v57  ;;  %v1934_v30 = vpack.c.bf16 %v841_v20, %v834_v19 }
  0x27   :  { %1741 = vset.pattern.permute.xlu0 %v1790_v22 }
  0x28   :  { %1740 = vset.pattern.permute.xlu1 %v1791_v23  ;;  %638 = vperm.xlu0 %1741, %v1841_v0   ;;  %v835_v23 = vsub.f32 %v833_v53, %v834_v19  ;;  %v646_v19 = vstv %s1974_s29 }
  0x29   :  { %624 = vperm.xlu1 %1740, %v1841_v0   ;;  %1647 = vmatpush3.bf16.msra.mxu1 %v1644_v57 }
  0x2a   :  { %1649 = vmatprep.subr.bf16.mxu1 %v1913_v56  ;;  %v836_v27 = vand.u32 4294901760, %v835_v23 }
  0x2c   :  { %1744 = vset.pattern.permute.xlu0 %v1792_v25 }
  0x2d   :  { %627 = vperm.xlu1 %1740, %v1854_v5   ;;  %655 = vperm.xlu0 %1744, %v1854_v5  }
  0x31   :  { %1742 = vset.pattern.permute.xlu1 %v1790_v22  ;;  %1746 = vset.pattern.permute.xlu0 %v1793_v28  ;;  %v1928_v22 = vpack.c.bf16 %v829_v18, %v822_v17 }
  0x32   :  { %641 = vperm.xlu1 %1742, %v1854_v5  }
  0x36   :  { %1743 = vset.pattern.permute.xlu1 %v1792_v25  ;;  %v842_v25 = vsub.f32 %v840_v54, %v841_v20 }
  0x37   :  { %652 = vperm.xlu1 %1743, %v1841_v0  }
  0x3b   :  { %1745 = vset.pattern.permute.xlu1 %v1793_v28  ;;  %v843_v28 = vand.u32 4294901760, %v842_v25 }
  0x3c   :  { %666 = vperm.xlu1 %1745, %v1841_v0   ;;  %v794_v0 = vand.u32 4294901760, %v793_v62  ;;  %v604_v62 = vstv %s1962_s27 }
  0x3d   :  { %v1932_v29 = vpack.c.bf16 %v843_v28, %v836_v27 }
  0x3e   :  { %v1920_v4 = vpack.c.bf16 %v801_v1, %v794_v0 }
  0x40   :  { %669 = vperm.xlu1 %1745, %v1854_v5   ;;  %v807_v5 = vsub.f32 %v805_v38, %v806_v2 }
  0x42   :  { %v808_v8 = vand.u32 4294901760, %v807_v5 }
  0x44   :  { %v1924_v13 = vpack.c.bf16 %v815_v9, %v808_v8 }
  0x90   :  { %v569_v33 = vpop.permute.xlu1 %568  ;;  %v44_v34 = vpop.permute.xlu0 %43 }
  0x91   :  { %vm48_vm1 = vcmp.eq.s32.totalorder %v44_v34, %v1936_v32  ;;  %vm573_vm4 = vcmp.eq.s32.totalorder %v569_v33, %v1936_v32 }
  0x92   :  { %v1939_v36 = vsel %vm48_vm1, 1.0, %v1794_v35  ;;  %v577_v2 = vsel %vm573_vm4, %v576_v61, 0.0 }
  0x93   :  { %v58_v37 = vsel %vm56_vm0, %v1939_v36, 0 }
  0x94   :  { %v47_v38 = vpop.permute.xlu0 %46  ;;  %v131_v39 = vsub.f32 %v58_v37, %v58_v37 }
  0x95   :  { %vm49_vm2 = vcmp.eq.s32.totalorder %v47_v38, %v1936_v32  ;;  %v583_v40 = vpop.permute.xlu1 %582  ;;  %v660_v38 = vstv %s1988_s30 }
  0x96   :  { %v1944_v41 = vsel %vm49_vm2, 1.0, %v1794_v35  ;;  %v132_v43 = vand.u32 4294901760, %v131_v39  ;;  %vm587_vm3 = vcmp.eq.s32.totalorder %v583_v40, %v1936_v32 }
  0x97   :  { %v61_v44 = vsel %vm56_vm0, %v1944_v41, 0 }
  0x98   :  { %v1948_v45 = vsub.f32 %v61_v44, %v61_v44  ;;  %v133_v46 = vsub.f32 %v131_v39, %v132_v43  ;;  %v572_v53 = vpop.permute.xlu0 %571 }
  0x99   :  { %v586_v47 = vpop.permute.xlu1 %585  ;;  %vm574_vm7 = vcmp.eq.s32.totalorder %v572_v53, %v1936_v32 }
  0x9a   :  { %v134_v48 = vand.u32 4294901760, %v133_v46  ;;  %v142_v49 = vand.u32 4294901760, %v1948_v45  ;;  %vm588_vm6 = vcmp.eq.s32.totalorder %v586_v47, %v1936_v32  ;;  %v578_v9 = vsel %vm574_vm7, %v576_v61, 0.0 }
  0x9b   :  { %v674_v46 = vstv %s1992_s7 }
  0x9c   :  { %1424 = vmatprep.mubr.f32.mxu0 %v134_v48  ;;  %v143_v50 = vsub.f32 %v1948_v45, %v142_v49 }
  0x9d   :  { %v597_v57 = vpop.permute.xlu0 %596 }
  0x9e   :  { %v600_v51 = vpop.permute.xlu1 %599  ;;  %v144_v52 = vand.u32 4294901760, %v143_v50  ;;  %vm601_vm5 = vcmp.eq.s32.totalorder %v597_v57, %v1936_v32 }
  0x9f   :  { %v605_v3 = vsel %vm601_vm5, %v604_v62, 0.0  ;;  %vm602_vm9 = vcmp.eq.s32.totalorder %v600_v51, %v1936_v32  ;;  %vm1299_vm5 = vcmask 785408  }
  0xa0   :  { %1425 = vmatmul.mubr.f32.vlgmr.msra.gmra.mrb[0].mxu0 %v144_v52  ;;  %v606_v17 = vsel %vm602_vm9, %v604_v62, 0.0 }
  0xa1   :  { %1431 = vmatprep.mubr.msk.f32.mxu0 %vm56_vm0, %v1939_v36  ;;  %1583 = vmatpush3.bf16.msra.mxu0 %v1870_v21  ;;  %v590_v21 = vstv %s1957_s3 }
  0xa2   :  { %1585 = vmatprep.subr.bf16.mxu0 %v1877_v24  ;;  %v591_v0 = vsel %vm587_vm3, %v590_v21, 0.0  ;;  %v614_v1 = vpop.permute.xlu0 %613  ;;  %v592_v8 = vsel %vm588_vm6, %v590_v21, 0.0  ;;  %vm689_vm3 = vcmask 523264  }
  0xa3   :  { %v611_v54 = vpop.permute.xlu1 %610  ;;  %v593_v5 = vadd.f32 %v591_v0, %v577_v2  ;;  %vm616_vm11 = vcmp.eq.s32.totalorder %v614_v1, %v1936_v32  ;;  %v594_v20 = vadd.f32 %v592_v8, %v578_v9 }
  0xa4   :  { %vm615_vm8 = vcmp.eq.s32.totalorder %v611_v54, %v1936_v32 }
  0xa5   :  { %v607_v15 = vadd.f32 %v605_v3, %v593_v5  ;;  %v608_v27 = vadd.f32 %v606_v17, %v594_v20 }
  0xa7   :  { %v639_v12 = vpop.permute.xlu0 %638 }
  0xa8   :  { %v625_v60 = vpop.permute.xlu1 %624  ;;  %1432 = vmatmul.mubr.msk.f32.vlgmr.msra.gmra.mrb[0].mxu0 %vm56_vm0, %v1944_v41  ;;  %vm643_vm12 = vcmp.eq.s32.totalorder %v639_v12, %v1936_v32 }
  0xa9   :  { %1438 = vmatprep.mubr.f32.mxu0 %v131_v39  ;;  %1587 = vmatpush3.bf16.msra.mxu0 %v1877_v24  ;;  %v618_v24 = vstv %s1964_s28  ;;  %vm629_vm10 = vcmp.eq.s32.totalorder %v625_v60, %v1936_v32  ;;  %v647_v33 = vsel %vm643_vm12, %v646_v19, 0.0 }
  0xaa   :  { %1589 = vmatprep.subr.bf16.mxu0 %v1864_v10  ;;  %v619_v11 = vsel %vm615_vm8, %v618_v24, 0.0  ;;  %v633_v18 = vsel %vm629_vm10, %v632_v6, 0.0  ;;  %v620_v25 = vsel %vm616_vm11, %v618_v24, 0.0 }
  0xab   :  { %v621_v23 = vadd.f32 %v619_v11, %v607_v15  ;;  %v622_v37 = vadd.f32 %v620_v25, %v608_v27 }
  0xac   :  { %v628_v63 = vpop.permute.xlu1 %627  ;;  %v656_v35 = vpop.permute.xlu0 %655 }
  0xad   :  { %vm630_vm13 = vcmp.eq.s32.totalorder %v628_v63, %v1936_v32  ;;  %v635_v28 = vadd.f32 %v633_v18, %v621_v23  ;;  %vm658_vm1 = vcmp.eq.s32.totalorder %v656_v35, %v1936_v32 }
  0xae   :  { %v634_v34 = vsel %vm630_vm13, %v632_v6, 0.0 }
  0xaf   :  { %v636_v44 = vadd.f32 %v634_v34, %v622_v37 }
  0xb0   :  { %1439 = vmatmul.mubr.f32.vlgmr.msra.gmra.mrb[0].mxu0 %v1948_v45  ;;  %v662_v45 = vsel %vm658_vm1, %v660_v38, 0.0 }
  0xb1   :  { %v642_v14 = vpop.permute.xlu1 %641  ;;  %1445 = vmatprep.mubr.f32.mxu0 %v132_v43  ;;  %1591 = vmatpush3.bf16.msra.mxu0 %v1864_v10  ;;  %v649_v43 = vadd.f32 %v647_v33, %v635_v28 }
  0xb2   :  { %1593 = vmatprep.subr.bf16.mxu0 %v1901_v42  ;;  %vm644_vm14 = vcmp.eq.s32.totalorder %v642_v14, %v1936_v32 }
  0xb3   :  { %v648_v39 = vsel %vm644_vm14, %v646_v19, 0.0 }
  0xb4   :  { %v650_v48 = vadd.f32 %v648_v39, %v636_v44 }
  0xb6   :  { %v653_v31 = vpop.permute.xlu1 %652  ;;  %v664_v53 = vadd.f32 %v662_v45, %v650_v48 }
  0xb7   :  { %vm657_vm15 = vcmp.eq.s32.totalorder %v653_v31, %v1936_v32 }
  0xb8   :  { %1446 = vmatmul.mubr.f32.vlgmr.msra.gmra.mrb[0].mxu0 %v142_v49  ;;  %v661_v40 = vsel %vm657_vm15, %v660_v38, 0.0 }
  0xb9   :  { %1452 = vmatprep.mubr.msk.f32.mxu0 %vm56_vm0, %v1939_v36  ;;  %1595 = vmatpush3.bf16.msra.mxu0 %v1901_v42  ;;  %v663_v50 = vadd.f32 %v661_v40, %v649_v43 }
  0xba   :  { %1597 = vmatprep.subr.bf16.mxu0 %v1864_v10 }
  0xbb   :  { %v667_v47 = vpop.permute.xlu1 %666 }
  0xbc   :  { %vm671_vm2 = vcmp.eq.s32.totalorder %v667_v47, %v1936_v32 }
  0xbd   :  { %v675_v49 = vsel %vm671_vm2, %v674_v46, 0.0 }
  0xbe   :  { %v677_v51 = vadd.f32 %v675_v49, %v663_v50 }
  0xbf   :  { %v670_v52 = vpop.permute.xlu1 %669 }
  0xc0   :  { %v691_v42 = vsel %vm689_vm3, %v677_v51, 0  ;;  %vm672_vm4 = vcmp.eq.s32.totalorder %v670_v52, %v1936_v32  ;;  %1453 = vmatmul.mubr.msk.f32.vlgmr.msra.gmra.mrb[0].mxu0 %vm56_vm0, %v1944_v41 }
  0xc1   :  { %v769_v54 = vand.u32 4294901760, %v691_v42  ;;  %v676_v57 = vsel %vm672_vm4, %v674_v46, 0.0  ;;  %1459 = vmatprep.mubr.msk.f32.mxu0 %vm56_vm0, %v1939_v36  ;;  %1599 = vmatpush3.bf16.msra.mxu0 %v1864_v10 }
  0xc2   :  { %v678_v60 = vadd.f32 %v676_v57, %v664_v53  ;;  %1601 = vmatprep.subr.bf16.mxu0 %v1913_v56 }
  0xc3   :  { %v770_v21 = vsub.f32 %v691_v42, %v769_v54 }
  0xc4   :  { %v694_v61 = vsel %vm689_vm3, %v678_v60, 0 }
  0xc5   :  { %v779_v62 = vand.u32 4294901760, %v694_v61  ;;  %1516 = vmatprep.mubr.f32.mxu1 %v770_v21  ;;  %v771_v63 = vand.u32 4294901760, %v770_v21 }
  0xc7   :  { %v780_v32 = vsub.f32 %v694_v61, %v779_v62  ;;  %v772_v0 = vsub.f32 %v770_v21, %v771_v63 }
  0xc8   :  { %1460 = vmatmul.mubr.msk.f32.vlgmr.msra.gmra.mrb[0].mxu0 %vm56_vm0, %v1944_v41  ;;  %vm1294_vm0 = vcmask 261120  }
  0xc9   :  { %1603 = vmatpush3.bf16.msra.mxu0 %v1913_v56  ;;  %1517 = vmatmul.mubr.f32.vlgmr.msra.gmra.mrb[0].mxu1 %v780_v32  ;;  %v773_v36 = vand.u32 4294901760, %v772_v0  ;;  %v781_v10 = vand.u32 4294901760, %v780_v32 }
  0xca   :  { %1651 = vmatpush3.bf16.msra.mxu1 %v1913_v56  ;;  %1535 = vmatprep.mubr.f32.mxu1 %v771_v63 }
  0xcb   :  { %1605 = vmatprep.subr.bf16.mxu0 %v1911_v55  ;;  %1478 = vmatprep.mubr.f32.mxu0 %v773_v36  ;;  %v782_v41 = vsub.f32 %v780_v32, %v781_v10 }
  0xcc   :  { %1653 = vmatprep.subr.bf16.mxu1 %v1911_v55 }
  0xcd   :  { %1607 = vmatpush3.bf16.msra.mxu0 %v1911_v55  ;;  %v783_v1 = vand.u32 4294901760, %v782_v41 }
  0xce   :  { %1655 = vmatpush3.bf16.msra.mxu1 %v1911_v55  ;;  %1609 = vmatprep.subr.bf16.mxu0 %v1915_v58 }
  0xcf   :  { %1657 = vmatprep.subr.bf16.mxu1 %v1915_v58 }
  0xd1   :  { %1611 = vmatpush3.bf16.msra.mxu0 %v1915_v58 }
  0xd2   :  { %1659 = vmatpush3.bf16.msra.mxu1 %v1915_v58  ;;  %1613 = vmatprep.subr.bf16.mxu0 %v1917_v59 }
  0xd3   :  { %1661 = vmatprep.subr.bf16.mxu1 %v1917_v59 }
  0xd5   :  { %1615 = vmatpush3.bf16.msra.mxu0 %v1917_v59 }
  0xd6   :  { %1663 = vmatpush3.bf16.msra.mxu1 %v1917_v59  ;;  %1617 = vmatprep.subr.bf16.mxu0 %v1920_v4 }
  0xd7   :  { %1665 = vmatprep.subr.bf16.mxu1 %v1922_v7 }
  0xd8   :  { %1479 = vmatmul.mubr.f32.vlgmr.msra.gmra.mrb[2].mxu0 %v783_v1 }
  0xd9   :  { %1619 = vmatpush3.bf16.msra.mxu0 %v1920_v4  ;;  %1497 = vmatprep.mubr.f32.mxu0 %v769_v54 }
  0xda   :  { %1536 = vmatmul.mubr.f32.vlgmr.msra.gmra.mrb[0].mxu1 %v781_v10  ;;  %1621 = vmatprep.subr.bf16.mxu0 %v1924_v13 }
  0xdb   :  { %1667 = vmatpush3.bf16.msra.mxu1 %v1922_v7  ;;  %1554 = vmatprep.mubr.f32.mxu1 %v769_v54 }
  0xdc   :  { %1669 = vmatprep.subr.bf16.mxu1 %v1926_v16 }
  0xdd   :  { %1623 = vmatpush3.bf16.msra.mxu0 %v1924_v13 }
  0xde   :  { %1625 = vmatprep.subr.bf16.mxu0 %v1928_v22 }
  0xdf   :  { %1671 = vmatpush3.bf16.msra.mxu1 %v1926_v16 }
  0xe0   :  { %1673 = vmatprep.subr.bf16.mxu1 %v1930_v26 }
  0xe1   :  { %1627 = vmatpush3.bf16.msra.mxu0 %v1928_v22 }
  0xe2   :  { %1629 = vmatprep.subr.bf16.mxu0 %v1932_v29 }
  0xe3   :  { %1675 = vmatpush3.bf16.msra.mxu1 %v1930_v26 }
  0xe4   :  { %1677 = vmatprep.subr.bf16.mxu1 %v1934_v30 }
  0xe5   :  { %1631 = vmatpush3.bf16.msra.mxu0 %v1932_v29 }
  0xe7   :  { %1679 = vmatpush3.bf16.msra.mxu1 %v1934_v30 }
  0xe8   :  { %1498 = vmatmul.mubr.f32.vlgmr.msra.gmra.mrb[2].mxu0 %v779_v62  ;;  %1681 = vmatprep.subr.bf16.mxu1 %v1913_v56 }
  0xea   :  { %1555 = vmatmul.mubr.f32.vlgmr.msra.gmra.mrb[0].mxu1 %v779_v62 }
  0xeb   :  { %1683 = vmatpush3.bf16.msra.mxu1 %v1913_v56  ;;  %1573 = vmatprep.mubr.f32.mxu1 %v769_v54  ;;  %v688_v56 = vstv %s2083_s5  ;;  %s1759_s5 = scalar_lea.vmem %s1310_s0, 256 }
  0xec   :  { %1685 = vmatprep.subr.bf16.mxu1 %v1911_v55  ;;  %p1760_p5 = scmp.ne.s32.totalorder %s1310_s0, %s1759_s5  ;;  %p1765_p7 = scmp.lt.s32.totalorder %s1759_s5, %s1759_s5 }
  0xee   :  { %p1766_p8 = por %p1765_p7, %p1764_p6 }
  0xef   :  { %1687 = vmatpush3.bf16.msra.mxu1 %v1911_v55 }
  0xf0   :  { %1689 = vmatprep.subr.bf16.mxu1 %v1915_v58  ;;  %p1767_p9 = pnand %p1766_p8, %p1760_p5 }
  0xf3   :  { %1691 = vmatpush3.bf16.msra.mxu1 %v1915_v58 }
  0xf4   :  { %1693 = vmatprep.subr.bf16.mxu1 %v1917_v59 }
  0xf7   :  { %1695 = vmatpush3.bf16.msra.mxu1 %v1917_v59 }
  0xfa   :  { %1574 = vmatmul.mubr.f32.vlgmr.msra.gmra.mrb[0].mxu1 %v779_v62 }
 0x19b   :  { %v1461_v4 = vpop.f32.mrb[0].mxu0 }
 0x19c   :  { %v555_v7 = vpop.f32.mrb[1].mxu0 }
 0x1bb   :  { %v1499_v13 = vpop.f32.mrb[2].mxu0 }
 0x1bc   :  { %v896_v16 = vpop.f32.mrb[3].mxu0  ;;  %v1696_v22 = vadd.f32 %v1499_v13, %v688_v56 }
 0x1bd   :  { %v1698_v26 = vadd.f32 %v896_v16, %v688_v56 }
 0x1cd   :  { %v1575_v55 = vpop.f32.mrb[0].mxu1 }
 0x1ce   :  { %v1697_v29 = vadd.f32 %v1696_v22, %v1575_v55  ;;  %v1266_v30 = vpop.f32.mrb[1].mxu1 }
 0x1cf   :  { %v1699_v24 = vadd.f32 %v1698_v26, %v1266_v30 }
 0x1d0   :  { %v1277_v58 = vmul.f32 %v1697_v29, %v1461_v4 }
 0x1d1   :  { %v1276_v2 = vmul.f32 %v1699_v24, %v555_v7 }
 0x1d2   :  { %1282 = vrot.lane.b32.xlu1 %v1277_v58, %s1795_s10 }
 0x1d3   :  { %1280 = vrot.lane.b32.xlu0 %v1276_v2, %s1795_s10 }
 0x1d6   :  { %1290 = vrot.lane.b32.xlu1 %v1697_v29, %s1796_s11 }
 0x1d7   :  { %1288 = vrot.lane.b32.xlu0 %v1699_v24, %s1796_s11 }
 0x244   :  { %v1283_v59 = vpop.permute.xlu1 %1282 }
 0x245   :  { %v1281_v3 = vpop.permute.xlu0 %1280  ;;  %v1296_v5 = vsel %vm1294_vm0, %v1461_v4, %v1283_v59 }
 0x246   :  { %v1295_v8 = vsel %vm1294_vm0, %v555_v7, %v1281_v3 }
 0x248   :  { %v1291_v6 = vpop.permute.xlu1 %1290 }
 0x249   :  { %v1298_v9 = vsel %vm689_vm3, %v1296_v5, %v1291_v6  ;;  %v1289_v11 = vpop.permute.xlu0 %1288 }
 0x24a   :  { %v1301_v12 = vsel %vm1299_vm5, %v1298_v9, 0.0  ;;  %v1297_v14 = vsel %vm689_vm3, %v1295_v8, %v1289_v11 }
 0x24b   :  { %1303 = vst [vmem:[#allocation6 + $0x8] sm:$0xff] %v1301_v12  ;;  %v1300_v15 = vsel %vm1299_vm5, %v1297_v14, 0.0 }
 0x24c   :  { %1302 = vst [vmem:[#allocation6] sm:$0xff] %v1300_v15 }
 0x24d   :  { %1770 = shalt.err (!%p1767_p9)
}
 0x24e   :  { %s1771_s13 = scalar_lea.hbm %s2084_s6, 256 }
 0x24f   :  { %p1772_p10 = scmp.ne.s32.totalorder %s2084_s6, %s1771_s13  ;;  %p1775_p11 = scmp.lt.u32.totalorder %s1771_s13, %s2084_s6 }
 0x251   :  { %p1777_p12 = pnand %p1775_p11, %p1772_p10 }
 0x253   :  { %1780 = shalt.err (!%p1777_p12)
}
 0x254   :  { %s1798_s18 = smov 128   ;;  %s1799_s19 = smov 8  }
 0x255   :  { %1315 = dma.vmem_to_hbm [thread:$0]  %s1310_s0, 256, %s2084_s6, [#allocation4], %s1798_s18, %s1798_s18, %s1799_s19  }
 0x256   :  { %1783 = dma.done.wait [#allocation4], 256  }
 0x257   :  { %1784 = vsyncadd [#allocation4], 4294967040 }
 0x258   :  { %1319 = vsyncpa [#allocation4], 1 }
 0x259   :  { %1320 = vsyncpa [#allocation5], 1 }

</bundles_post_ra>
